<compile_context>
chip_gen: v6e
topology: v6e:2x2x1
jax: 0.10.0
libtpu: 0.0.40
codegen_flags: <defaults>
</compile_context>

<pallas_src>
import jax
import jax.numpy as jnp
from jax.experimental import pallas as pl
from jax.experimental.pallas import tpu as pltpu


def _loss_kernel(student_ref, teacher_ref, labels_ref, out_ref):
    s = student_ref[...].astype(jnp.float32)   # (TB, C)
    t = teacher_ref[...].astype(jnp.float32)   # (TB, C)
    lab = labels_ref[...]                      # (TB, 1) int32
    TB, C = s.shape

    # MXU reduction vector (class-dim sums go to the matmul slot, not the VPU/XLU).
    ones_c = jnp.ones((C, 1), dtype=jnp.float32)

    # ---- student log-softmax over class dim (numerically stable) ----
    s_shift = s - jnp.max(s, axis=-1, keepdims=True)
    s_exp = jnp.exp(s_shift)
    s_sum = jnp.dot(s_exp, ones_c, preferred_element_type=jnp.float32)   # (TB, 1)
    log_p = s_shift - jnp.log(s_sum)

    # ---- teacher softmax + log-softmax sharing one exp / one log ----
    t_shift = t - jnp.max(t, axis=-1, keepdims=True)
    t_exp = jnp.exp(t_shift)
    t_sum = jnp.dot(t_exp, ones_c, preferred_element_type=jnp.float32)   # (TB, 1)
    t_log_q = t_shift - jnp.log(t_sum)
    t_q = t_exp * pl.reciprocal(t_sum, approx=True)                      # EUP slot

    # ---- fused CE + KL partial sum for this batch tile ----
    #   sum( q * log q - (q + onehot(label)) * log p )
    class_ids = jax.lax.broadcasted_iota(jnp.int32, (TB, C), 1)
    coeff = t_q + (class_ids == lab).astype(jnp.float32)
    fused = t_q * t_log_q - coeff * log_p                                # (TB, C)
    row_sum = jnp.dot(fused, ones_c, preferred_element_type=jnp.float32)  # (TB, 1) on MXU
    partial = jnp.sum(row_sum)

    # Lane-dense partial output (one unmasked (8,128) block per tile).
    out_ref[...] = jnp.full(out_ref.shape, partial, dtype=jnp.float32)


def _vmem_capacity_bytes():
    """Best-effort trace-time VMEM capacity query; conservative (v7x) fallback."""
    try:
        info = pltpu.get_tpu_info()
        for attr in ("vmem_capacity_bytes", "vmem_bytes", "vmem_size_bytes"):
            v = getattr(info, attr, None)
            if v:
                return int(v)
    except Exception:
        pass
    return 64 * 1024 * 1024


def _pick_batch_tile(B, C, f32_tile_budget_bytes):
    """Batch tile (multiple of 8) whose (tile_b, C) f32 working set fits the budget,
    with >= 2 grid steps whenever B > 8 (so v7x can use both TensorCores)."""
    max_rows = max(8, ((f32_tile_budget_bytes // (C * 4)) // 8) * 8)
    if B <= 8:
        return 8
    n_tiles = max(2, pl.cdiv(B, max_rows))
    tile_b = ((pl.cdiv(B, n_tiles) + 7) // 8) * 8
    return max(8, min(tile_b, max_rows))


def loss_fn(student_logits, teacher_logits, labels, *, tile_b=None, vmem_limit_bytes=None):
    """student_logits, teacher_logits: (B, C) float (f32 or bf16); labels: (B,) int class ids."""
    B, C = student_logits.shape
    labels_i32 = labels.astype(jnp.int32)

    # Generation-specific VMEM budget: budget the f32 working set, not HBM bytes.
    vmem_cap = _vmem_capacity_bytes()
    if vmem_cap >= 100 * 1024 * 1024:        # v5e / v6e: 128 MiB physical VMEM
        f32_tile_budget = 6 * 1024 * 1024
        default_limit = 80 * 1024 * 1024
    else:                                    # v7x: 64 MiB physical VMEM
        f32_tile_budget = 3 * 1024 * 1024
        default_limit = 40 * 1024 * 1024
    if vmem_limit_bytes is None:
        vmem_limit_bytes = default_limit

    if tile_b is None:
        tile_b = _pick_batch_tile(B, C, f32_tile_budget)
    tile_b = max(8, ((int(tile_b) + 7) // 8) * 8)   # sublane-aligned

    num_tiles = pl.cdiv(B, tile_b)
    B_pad = num_tiles * tile_b

    # cdiv grid + padding: padded rows (zero logits, label -1) contribute exactly 0
    # to both the CE and KL terms (uniform q == uniform p; -1 never matches a class).
    if B_pad != B:
        pad = B_pad - B
        student_logits = jnp.pad(student_logits, ((0, pad), (0, 0)))
        teacher_logits = jnp.pad(teacher_logits, ((0, pad), (0, 0)))
        labels_i32 = jnp.pad(labels_i32, ((0, pad),), constant_values=-1)
    labels_2d = labels_i32.reshape(B_pad, 1)

    partials = pl.pallas_call(
        _loss_kernel,
        out_shape=jax.ShapeDtypeStruct((num_tiles, 8, 128), jnp.float32),
        grid=(num_tiles,),
        in_specs=[
            pl.BlockSpec((tile_b, C), lambda i: (i, 0)),
            pl.BlockSpec((tile_b, C), lambda i: (i, 0)),
            pl.BlockSpec((tile_b, 1), lambda i: (i, 0)),
        ],
        out_specs=pl.BlockSpec((1, 8, 128), lambda i: (i, 0, 0)),
        compiler_params=pltpu.CompilerParams(
            dimension_semantics=("parallel",),
            vmem_limit_bytes=vmem_limit_bytes,
        ),
    )(student_logits, teacher_logits, labels_2d)

    # Sum the per-tile partials and apply the 1/B (mean / batchmean) scaling once.
    return jnp.sum(partials[:, 0, 0]) * (1.0 / B)


def _reference(student_logits, teacher_logits, labels):
    # pure-JAX reference for validation
    log_p = jax.nn.log_softmax(student_logits.astype(jnp.float32), axis=-1)
    ce = -jnp.mean(jnp.take_along_axis(log_p, labels[:, None], axis=-1))
    log_q = jax.nn.log_softmax(teacher_logits.astype(jnp.float32), axis=-1)
    q = jnp.exp(log_q)
    kl = jnp.sum(q * (log_q - log_p)) / student_logits.shape[0]
    return ce + kl


if __name__ == "__main__":
    key = jax.random.PRNGKey(0)
    k1, k2, k3, k4, k5, k6 = jax.random.split(key, 6)

    # Main case: B=32, C=128 (tolerances loosened for approx reciprocal on EUP).
    B, C = 32, 128
    student = jax.random.normal(k1, (B, C), dtype=jnp.float32)
    teacher = jax.random.normal(k2, (B, C), dtype=jnp.float32)
    labels = jax.random.randint(k3, (B,), 0, C, dtype=jnp.int32)
    ref = _reference(student, teacher, labels)

    # Explicit batch tiling (grid of 4 tiles of 8 rows).
    loss_tiled = loss_fn(student, teacher, labels, tile_b=8)
    jax.block_until_ready(loss_tiled)
    assert jnp.allclose(loss_tiled, ref, rtol=2e-3, atol=2e-3), (loss_tiled, ref)

    # Auto tile selection.
    loss_auto = loss_fn(student, teacher, labels)
    jax.block_until_ready(loss_auto)
    assert jnp.allclose(loss_auto, ref, rtol=2e-3, atol=2e-3), (loss_auto, ref)

    # Awkward batch (not a multiple of 8) exercises the cdiv + padding path.
    B2, C2 = 10, 48
    student2 = jax.random.normal(k4, (B2, C2), dtype=jnp.float32)
    teacher2 = jax.random.normal(k5, (B2, C2), dtype=jnp.float32)
    labels2 = jax.random.randint(k6, (B2,), 0, C2, dtype=jnp.int32)
    ref2 = _reference(student2, teacher2, labels2)
    loss2 = loss_fn(student2, teacher2, labels2)
    jax.block_until_ready(loss2)
    assert jnp.allclose(loss2, ref2, rtol=2e-3, atol=2e-3), (loss2, ref2)

    # bf16 logits in HBM (halves HBM bytes for this bandwidth-bound loss).
    student_bf16 = student.astype(jnp.bfloat16)
    teacher_bf16 = teacher.astype(jnp.bfloat16)
    loss_bf16 = loss_fn(student_bf16, teacher_bf16, labels)
    jax.block_until_ready(loss_bf16)
    ref_bf16 = _reference(student_bf16, teacher_bf16, labels)
    assert jnp.allclose(loss_bf16, ref_bf16, rtol=2e-3, atol=2e-3), (loss_bf16, ref_bf16)

    print("KERNEL_OK")
</pallas_src>

<mosaic_0001>
module attributes {stable_mosaic.version = 11 : i64} {
  func.func @_loss_kernel(%arg0: i32, %arg1: memref<8x128xf32, #tpu.memory_space<vmem>>, %arg2: memref<8x128xf32, #tpu.memory_space<vmem>>, %arg3: memref<8x1xi32, #tpu.memory_space<vmem>>, %arg4: memref<1x8x128xf32, #tpu.memory_space<vmem>>) attributes {dimension_semantics = [#tpu.dimension_semantics<parallel>], iteration_bounds = array<i64: 4>, scalar_prefetch = 0 : i64, scratch_operands = 0 : i64, tpu.core_type = #tpu.core_type<tc>, window_params = [{transform_indices = @transform_0, window_bounds = array<i64: 8, 128>}, {transform_indices = @transform_1, window_bounds = array<i64: 8, 128>}, {transform_indices = @transform_2, window_bounds = array<i64: 8, 1>}, {transform_indices = @transform_3, window_bounds = array<i64: 1, 8, 128>}]} {
    %c0 = arith.constant 0 : index
    %c0_0 = arith.constant 0 : index
    %0 = vector.load %arg1[%c0, %c0_0] : memref<8x128xf32, #tpu.memory_space<vmem>>, vector<8x128xf32>
    %c0_1 = arith.constant 0 : index
    %c0_2 = arith.constant 0 : index
    %1 = vector.load %arg2[%c0_1, %c0_2] : memref<8x128xf32, #tpu.memory_space<vmem>>, vector<8x128xf32>
    %c0_3 = arith.constant 0 : index
    %c0_4 = arith.constant 0 : index
    %2 = vector.load %arg3[%c0_3, %c0_4] : memref<8x1xi32, #tpu.memory_space<vmem>>, vector<8x1xi32>
    %cst = arith.constant 1.000000e+00 : f32
    %3 = vector.broadcast %cst : f32 to vector<128x1xf32>
    %cst_5 = arith.constant dense<0xFF800000> : vector<8xf32>
    %4 = vector.multi_reduction <maximumf>, %0, %cst_5 [1] : vector<8x128xf32> to vector<8xf32>
    %5 = vector.shape_cast %4 : vector<8xf32> to vector<8x1xf32>
    %6 = vector.broadcast %5 : vector<8x1xf32> to vector<8x128xf32>
    %7 = arith.subf %0, %6 : vector<8x128xf32>
    %8 = math.exp %7 : vector<8x128xf32>
    %cst_6 = arith.constant dense<0.000000e+00> : vector<8x1xf32>
    %9 = tpu.matmul %8, %3, %cst_6 {dimension_numbers = #tpu.dot_dimension_numbers<[1], [0], [0], [1], [0, 0, 1, 1], [], []>} : vector<8x128xf32>, vector<128x1xf32>, vector<8x1xf32> -> vector<8x1xf32>
    %10 = math.log %9 : vector<8x1xf32>
    %11 = vector.broadcast %10 : vector<8x1xf32> to vector<8x128xf32>
    %12 = arith.subf %7, %11 : vector<8x128xf32>
    %cst_7 = arith.constant dense<0xFF800000> : vector<8xf32>
    %13 = vector.multi_reduction <maximumf>, %1, %cst_7 [1] : vector<8x128xf32> to vector<8xf32>
    %14 = vector.shape_cast %13 : vector<8xf32> to vector<8x1xf32>
    %15 = vector.broadcast %14 : vector<8x1xf32> to vector<8x128xf32>
    %16 = arith.subf %1, %15 : vector<8x128xf32>
    %17 = math.exp %16 : vector<8x128xf32>
    %cst_8 = arith.constant dense<0.000000e+00> : vector<8x1xf32>
    %18 = tpu.matmul %17, %3, %cst_8 {dimension_numbers = #tpu.dot_dimension_numbers<[1], [0], [0], [1], [0, 0, 1, 1], [], []>} : vector<8x128xf32>, vector<128x1xf32>, vector<8x1xf32> -> vector<8x1xf32>
    %19 = math.log %18 : vector<8x1xf32>
    %20 = vector.broadcast %19 : vector<8x1xf32> to vector<8x128xf32>
    %21 = arith.subf %16, %20 : vector<8x128xf32>
    %22 = tpu.reciprocal %18 {approx = true} : vector<8x1xf32> -> vector<8x1xf32>
    %23 = vector.broadcast %22 : vector<8x1xf32> to vector<8x128xf32>
    %24 = arith.mulf %17, %23 : vector<8x128xf32>
    %25 = tpu.iota {dimensions = array<i32: 1>} : vector<8x128xi32>
    %26 = vector.broadcast %2 : vector<8x1xi32> to vector<8x128xi32>
    %27 = arith.cmpi eq, %25, %26 : vector<8x128xi32>
    %28 = arith.extui %27 : vector<8x128xi1> to vector<8x128xi32>
    %29 = arith.sitofp %28 : vector<8x128xi32> to vector<8x128xf32>
    %30 = arith.addf %24, %29 : vector<8x128xf32>
    %31 = arith.mulf %24, %21 : vector<8x128xf32>
    %32 = arith.mulf %30, %12 : vector<8x128xf32>
    %33 = arith.subf %31, %32 : vector<8x128xf32>
    %cst_9 = arith.constant dense<0.000000e+00> : vector<8x1xf32>
    %34 = tpu.matmul %33, %3, %cst_9 {dimension_numbers = #tpu.dot_dimension_numbers<[1], [0], [0], [1], [0, 0, 1, 1], [], []>} : vector<8x128xf32>, vector<128x1xf32>, vector<8x1xf32> -> vector<8x1xf32>
    %35 = vector.shape_cast %34 : vector<8x1xf32> to vector<1x8x1xf32>
    %cst_10 = arith.constant dense<0.000000e+00> : vector<1xf32>
    %36 = vector.multi_reduction <add>, %35, %cst_10 [1, 2] : vector<1x8x1xf32> to vector<1xf32>
    %37 = vector.shape_cast %36 : vector<1xf32> to vector<1x1x1xf32>
    %38 = vector.extract %37[0, 0, 0] : f32 from vector<1x1x1xf32>
    %39 = vector.broadcast %38 : f32 to vector<1x8x128xf32>
    %c0_11 = arith.constant 0 : index
    %c0_12 = arith.constant 0 : index
    %c0_13 = arith.constant 0 : index
    %40 = vector.load %arg4[%c0_11, %c0_12, %c0_13] : memref<1x8x128xf32, #tpu.memory_space<vmem>>, vector<1x8x128xf32>
    tpu.vector_store %arg4[%c0_11, %c0_12, %c0_13], %39 {strides = array<i32>} : memref<1x8x128xf32, #tpu.memory_space<vmem>>, vector<1x8x128xf32>,
    return
  }
  func.func @transform_0(%arg0: i32) -> (i32, i32) {
    %c0_i32 = arith.constant 0 : i32
    %c0_i32_0 = arith.constant 0 : i32
    return %arg0, %c0_i32 : i32, i32
  }
  func.func @transform_1(%arg0: i32) -> (i32, i32) {
    %c0_i32 = arith.constant 0 : i32
    %c0_i32_0 = arith.constant 0 : i32
    return %arg0, %c0_i32 : i32, i32
  }
  func.func @transform_2(%arg0: i32) -> (i32, i32) {
    %c0_i32 = arith.constant 0 : i32
    %c0_i32_0 = arith.constant 0 : i32
    return %arg0, %c0_i32 : i32, i32
  }
  func.func @transform_3(%arg0: i32) -> (i32, i32, i32) {
    %c0_i32 = arith.constant 0 : i32
    %c0_i32_0 = arith.constant 0 : i32
    %c0_i32_1 = arith.constant 0 : i32
    return %arg0, %c0_i32, %c0_i32_0 : i32, i32, i32
  }
}

</mosaic_0001>

<bundles_post_ra>
// kernel: tpu_custom_call.1
= control target key start
LH: loop header
LB: loop body
LE: loop exit
PB: predicated region body
PF: predicated region fallthrough
CT: control target
= control target key end

     0   :  { %8 = vsyncpa [#allocation3], 0  ;;  %s1229_s0 = inlined_call_operand.vmem [shape: f32[32,128], index: 0, kind: input, shape index: {}]   ;;  %s1230_s1 = inlined_call_operand.hbm [shape: f32[32,128], index: 1, kind: input, shape index: {}]   ;;  %s1231_s2 = inlined_call_operand.vmem [shape: s32[32,1], index: 2, kind: input, shape index: {}]   ;;  %s1232_s3 = inlined_call_operand.hbm [shape: f32[4,8,128], index: 3, kind: output, shape index: {}]  }
   0x1   :  { %10 = vsyncpa [#allocation3 + $0x1], 0 }
   0x2   :  { %11 = vsyncpa [#allocation4], 0 }
   0x3   :  { %13 = vsyncpa [#allocation4 + $0x1], 0  ;;  %s954_s12 = smov 0   ;;  %s956_s13 = smov 0  }
   0x4   :  { %s958_s14 = smov 0   ;;  %s960_s15 = smov 0  }
   0x5 LB: > { %s975_s16 = sadd.s32 4294967295, %s926_s15   ;;  %s599_s17 = sadd.s32 4294967294, %s926_s15   ;;  %s926_s15 = sphi %s960_s15, %s1248_s15   ;;  %s922_s14 = sphi %s958_s14, %s1247_s14   ;;  %s918_s13 = sphi %s956_s13, %s1246_s13   ;;  %s914_s12 = sphi %s954_s12, %s1245_s12  }
   0x6   : > { %s979_s18 = sadd.s32 1, %s926_s15   ;;  %s52_s19 = sadd.s32 1, %s922_s14 }
   0x7   : > { %s49_s20 = ssub.s32 %s926_s15, %s979_s18  ;;  %p59_p0 = scmp.ne.s32.totalorder %s922_s14, %s918_s13 }
   0x8   : > { %p50_p1 = scmp.eq.s32.totalorder %s49_s20, 0  ;;  %p60_p2 = scmp.eq.s32.totalorder %s926_s15, 0 }
   0x9   : > { %p65_p3 = scmp.ne.s32.totalorder %s918_s13, %s914_s12  ;;  %p66_p4 = scmp.eq.s32.totalorder %s975_s16, 0 }
   0xa   : > { %s991_s21 = scalar_select %p50_p1, %s922_s14, %s52_s19  }
   0xb   : > { %p993_p5 = por %p60_p2, %p59_p0  ;;  %p997_p6 = por %p66_p4, %p65_p3 }
   0xc   : > { %p115_p7 = scmp.eq.s32.totalorder %s975_s16, 3  ;;  %p121_p8 = scmp.eq.s32.totalorder %s599_s17, 3 }
   0xd   : > { %s1236_s23 = scalar_select %p997_p6, 1, 0 }
   0xe   : > { %p784_p9 = scmp.lt.s32.totalorder %s926_s15, 4  ;;  %p1003_p10 = por %p115_p7, %p59_p0 }
   0xf   : > { %p1007_p11 = por %p121_p8, %p65_p3  ;;  %s148_s26 = sand.u32 1, %s922_s14  }
  0x10   : > { %s1237_s24 = scalar_select %p1003_p10, 1, 0 }
  0x11   : > { %s1238_s25 = scalar_select %p1007_p11, 1, 0 }
  0x12   : > { %s603_s27 = sshll.u32 %s926_s15, 7  ;;  %s602_s28 = sshll.u32 %s148_s26, 3 }
  0x13   : > { %s1016_s4 = scalar_lea.hbm %s1230_s1, %s603_s27  ;;  %s152_s5 = scalar_lea.vmem [#allocation2], %s602_s28 }
  0x14   : > { %s159_s6 = sshll.u32 %s152_s5, 4  ;;  %p1020_p12 = pnand %p784_p9, %p993_p5  ;;  %s1024_s6 = int_to_ptr.vmem [resolvable:$true] %s159_s6 }
  0x15   : > { %s149_s8 = scalar_lea.sflag [#allocation3], %s148_s26  ;;  %s834_s9 = scalar_lea.hbm %s1016_s4, 128 }
  0x16   : > { %p835_p1 = scmp.ne.s32.totalorder %s1016_s4, %s834_s9  ;;  %p836_p2 = pneg %p1020_p12 }
  0x17   : > { %s839_s17 = scalar_lea.hbm %s1230_s1, 512  ;;  %p840_p5 = scmp.lt.s32.totalorder %s1016_s4, %s1230_s1 }
  0x18   : > { %p837_p3 = pnand %p836_p2, %p835_p1  ;;  %p841_p7 = scmp.lt.s32.totalorder %s839_s17, %s834_s9 }
  0x1a   : > { %p838_p4 = pneg %p837_p3  ;;  %p842_p8 = por %p841_p7, %p840_p5 }
  0x1c   : > { %p843_p9 = pnand %p842_p8, %p838_p4 }
  0x1e   : > { %846 = shalt.err (!%p843_p9)
}
  0x1f   : > { %s847_s22 = scalar_lea.vmem %s1024_s6, 128  ;;  %s928_s26 = smov [#allocation2]  }
  0x20   : > { %p848_p13 = scmp.ne.s32.totalorder %s1024_s6, %s847_s22  ;;  %s852_s27 = sshll.u32 %s928_s26, 4  ;;  %s853_s27 = int_to_ptr.vmem [resolvable:$false] %s852_s27 }
  0x21   : > { %s854_s28 = scalar_lea.vmem %s853_s27, 256  ;;  %p855_p3 = scmp.lt.s32.totalorder %s1024_s6, %s853_s27 }
  0x22   : > { %p850_p0 = pnand %p848_p13, %p836_p2  ;;  %p856_p11 = scmp.lt.s32.totalorder %s854_s28, %s847_s22 }
  0x24   : > { %p851_p1 = pneg %p850_p0  ;;  %p857_p10 = por %p856_p11, %p855_p3 }
  0x26   : > { %p858_p6 = pnand %p857_p10, %p851_p1 }
  0x28   : > { %861 = shalt.err (!%p858_p6)
}
  0x29   : > { %779 = dma.hbm_to_vmem [thread:$0]  (!%p1020_p12), %s1016_s4, 128, %s1024_s6, %s149_s8  }
  0x2a   : > { %p1240_p4 = scmp.lt.s32.totalorder %s926_s15, 5  ;;  %p1241_p5 = scmp.ge.s32.totalorder %s926_s15, 1 }
  0x2c   : > { %p172_p13 = pnand %p1241_p5, %p1240_p4 }
  0x2d   : > { %s1051_s29 = sand.u32 (!%p172_p13), 1, %s918_s13   ;;  %p1242_p6 = scmp.ne.s32.totalorder (!%p172_p13), %s1236_s23, 0 }
  0x2e   : > { %175 = sbr.rel (%p172_p13) target bundleno = 970 (0x3ca), region = 32  ;;  %s605_s30 = sshll.u32 (!%p172_p13), %s1051_s29, 3 }
  0x2f   : > { %s178_s5 = scalar_lea.sflag (!%p172_p13), [#allocation3], %s1051_s29  ;;  %s181_s7 = scalar_lea.vmem (!%p172_p13), [#allocation2], %s605_s30 }
  0x33   : > { %905 = dma.done.wait (%p1242_p6), %s178_s5, 128  }
  0x34   : > { %907 = vsyncadd (%p1242_p6), %s178_s5, 4294967168  ;;  %p212_p10 = scmp.lt.s32.totalorder %s975_s16, 3  ;;  %v929_v0 = vmov 0.0   ;;  %v930_v1 = vmov 1.0   ;;  %v221_v3 = vld [vmem:[%s181_s7] sm:$0xff]  ;;  %vm931_vm0 = vmmov 0   ;;  %v396_v23 = vlaneseq }
  0x35   : > { %665 = vmatprep.subr.mxu0 %v929_v0  ;;  %700 = vmatprep.subr.mxu1 %v929_v0  ;;  %v932_v12 = vmov 0   ;;  %vm478_vm2 = vcmask 7168   ;;  %s211_s19 = scalar_lea.vmem [#allocation5], %s605_s30  ;;  %s611_s22 = sshll.u32 %s975_s16, 7 }
  0x36   : > { %s1065_s4 = scalar_select %p212_p10, %s975_s16, 3  ;;  %666 = vmatpush3.msra.mxu0 %v930_v1  ;;  %701 = vmatpush3.msra.mxu1 %v930_v1  ;;  %v397_v25 = vand.u32 127, %v396_v23 }
  0x37   : > { %667 = vmatprep.subr.mxu0 %v929_v0  ;;  %702 = vmatprep.subr.mxu1 %v929_v0  ;;  %s505_s20 = sshll.u32 %s211_s19, 4  ;;  %s503_s5 = scalar_lea.hbm %s1232_s3, %s611_s22  ;;  %s1190_s20 = int_to_ptr.vmem [resolvable:$true] %s505_s20 }
  0x38   : > { %s607_s23 = sshll.u32 %s1065_s4, 3  ;;  %668 = vmatpush3.msra.mxu0 %v930_v1  ;;  %703 = vmatpush3.msra.mxu1 %v930_v1  ;;  %s492_s7 = scalar_lea.sflag [#allocation4], %s1051_s29 }
  0x39   : > { %s215_s9 = scalar_lea.vmem %s1229_s0, %s607_s23  ;;  %669 = vmatprep.subr.mxu0 %v929_v0  ;;  %704 = vmatprep.subr.mxu1 %v929_v0  ;;  %s219_s17 = scalar_lea.vmem %s1231_s2, %s607_s23 }
  0x3a   : > { %670 = vmatpush3.msra.mxu0 %v930_v1  ;;  %705 = vmatpush3.msra.mxu1 %v930_v1  ;;  %v220_v2 = vld [vmem:[%s215_s9] sm:$0xff]  ;;  %s862_s4 = scalar_lea.vmem %s1190_s20, 128  ;;  %p1243_p12 = scmp.ne.s32.totalorder %s1237_s24, 0 }
  0x3b   : > { %671 = vmatprep.subr.mxu0 %v929_v0  ;;  %706 = vmatprep.subr.mxu1 %v929_v0  ;;  %v222_v13 = vld [vmem:[%s219_s17] sm:$0xff]  ;;  %p863_p11 = scmp.ne.s32.totalorder %s1190_s20, %s862_s4  ;;  %s933_s30 = smov [#allocation5]  }
  0x3c   : > { %223 = vmax.xlane.f32.xlu0 %v220_v2  ;;  %672 = vmatpush3.msra.mxu0 %v930_v1  ;;  %s866_s16 = sshll.u32 %s933_s30, 4  ;;  %s867_s16 = int_to_ptr.vmem [resolvable:$false] %s866_s16 }
  0x3d   : > { %673 = vmatprep.subr.mxu0 %v929_v0  ;;  %707 = vmatpush3.msra.mxu1 %v930_v1  ;;  %p864_p0 = pnand %p863_p11, %p1243_p12  ;;  %s868_s23 = scalar_lea.vmem %s867_s16, 256 }
  0x3e   : > { %674 = vmatpush3.msra.mxu0 %v930_v1  ;;  %708 = vmatprep.subr.mxu1 %v929_v0  ;;  %p869_p7 = scmp.lt.s32.totalorder %s1190_s20, %s867_s16  ;;  %p870_p8 = scmp.lt.s32.totalorder %s868_s23, %s862_s4 }
  0x3f   : > { %675 = vmatprep.subr.mxu0 %v929_v0  ;;  %709 = vmatpush3.msra.mxu1 %v930_v1  ;;  %p865_p2 = pneg %p864_p0 }
  0x40   : > { %306 = vmax.xlane.f32.xlu0 %v221_v3  ;;  %676 = vmatpush3.msra.mxu0 %v930_v1  ;;  %p871_p9 = por %p870_p8, %p869_p7 }
  0x41   : > { %677 = vmatprep.subr.mxu0 %v929_v0  ;;  %710 = vmatprep.subr.mxu1 %v929_v0 }
  0x42   : > { %678 = vmatpush3.msra.mxu0 %v930_v1  ;;  %711 = vmatpush3.msra.mxu1 %v930_v1  ;;  %p872_p1 = pnand %p871_p9, %p865_p2 }
  0x43   : > { %679 = vmatprep.subr.mxu0 %v929_v0  ;;  %712 = vmatprep.subr.mxu1 %v929_v0 }
  0x44   : > { %680 = vmatpush3.msra.mxu0 %v930_v1  ;;  %713 = vmatpush3.msra.mxu1 %v930_v1 }
  0x45   : > { %681 = vmatprep.subr.mxu0 %v929_v0  ;;  %714 = vmatprep.subr.mxu1 %v929_v0 }
  0x46   : > { %682 = vmatpush3.msra.mxu0 %v930_v1  ;;  %715 = vmatpush3.msra.mxu1 %v930_v1 }
  0x47   : > { %683 = vmatprep.subr.mxu0 %v929_v0  ;;  %716 = vmatprep.subr.mxu1 %v929_v0 }
  0x48   : > { %684 = vmatpush3.msra.mxu0 %v930_v1  ;;  %717 = vmatpush3.msra.mxu1 %v930_v1 }
  0x49   : > { %685 = vmatprep.subr.mxu0 %v929_v0  ;;  %718 = vmatprep.subr.mxu1 %v929_v0 }
  0x4a   : > { %686 = vmatpush3.msra.mxu0 %v930_v1  ;;  %719 = vmatpush3.msra.mxu1 %v930_v1 }
  0x4b   : > { %687 = vmatprep.subr.mxu0 %v929_v0  ;;  %720 = vmatprep.subr.mxu1 %v929_v0 }
  0x4c   : > { %688 = vmatpush3.msra.mxu0 %v930_v1  ;;  %721 = vmatpush3.msra.mxu1 %v930_v1 }
  0x4d   : > { %689 = vmatprep.subr.mxu0 %v929_v0  ;;  %722 = vmatprep.subr.mxu1 %v929_v0 }
  0x4e   : > { %690 = vmatpush3.msra.mxu0 %v930_v1  ;;  %723 = vmatpush3.msra.mxu1 %v930_v1 }
  0x4f   : > { %691 = vmatprep.subr.mxu0 %v929_v0  ;;  %724 = vmatprep.subr.mxu1 %v929_v0 }
  0x50   : > { %692 = vmatpush3.msra.mxu0 %v930_v1  ;;  %725 = vmatpush3.msra.mxu1 %v930_v1 }
  0x51   : > { %693 = vmatprep.subr.mxu0 %v929_v0  ;;  %726 = vmatprep.subr.mxu1 %v929_v0 }
  0x52   : > { %694 = vmatpush3.msra.mxu0 %v930_v1  ;;  %697 = vmatprep.mubr.msk.f32.mxu0 %vm931_vm0, %v929_v0 }
  0x53   : > { %695 = vmatprep.subr.mxu0 %v929_v0  ;;  %727 = vmatpush3.msra.mxu1 %v930_v1 }
  0x54   : > { %696 = vmatpush3.msra.mxu0 %v930_v1  ;;  %728 = vmatprep.subr.mxu1 %v929_v0 }
  0x55   : > { %729 = vmatpush3.msra.mxu1 %v930_v1  ;;  %732 = vmatprep.mubr.msk.f32.mxu1 %vm931_vm0, %v929_v0 }
  0x56   : > { %730 = vmatprep.subr.mxu1 %v929_v0  ;;  %735 = vmatprep.subr.mxu0 %v929_v0 }
  0x57   : > { %731 = vmatpush3.msra.mxu1 %v930_v1  ;;  %822 = vset.pattern.permute.xlu1 %v932_v12 }
  0x58   : > { %823 = vset.pattern.permute.xlu0 %v932_v12  ;;  %399 = vperm.xlu1 %822, %v222_v13  }
  0xc5   : > { %v224_v4 = vpop.xlane.xlu0 %223 }
  0xc6   : > { %v1140_v5 = vsub.f32 %v220_v2, %v224_v4 }
  0xc8   : > { %v226_v6 = vmul.f32 1.442695, %v1140_v5 }
  0xc9   : > { %v307_v7 = vpop.xlane.xlu0 %306 }
  0xca   : > { %824 = vpow2.f32 %v226_v6  ;;  %v1143_v8 = vsub.f32 %v221_v3, %v307_v7 }
  0xcc   : > { %v309_v9 = vmul.f32 1.442695, %v1143_v8 }
  0xce   : > { %826 = vpow2.f32 %v309_v9 }
  0xd3   : > { %v400_v24 = vpop.permute.xlu1 %399 }
  0xd4   : > { %vm401_vm1 = vcmp.eq.s32.totalorder %v397_v25, %v400_v24 }
  0xd5   : > { %v609_v28 = vsel %vm401_vm1, 1.0, %v929_v0 }
  0xd7   : > { %v825_v10 = vpop.eup %824 }
  0xd8   : > { %698 = vmatmul.mubr.f32.vlgmr.msra.gmra.mxu0 %v825_v10 }
  0xd9   : > { %736 = vmatpush3.msra.mxu0 %v930_v1  ;;  %767 = vmatprep.mubr.msk.f32.mxu0 %vm931_vm0, %v929_v0 }
  0xda   : > { %737 = vmatprep.subr.mxu0 %v929_v0 }
  0xdb   : > { %v827_v11 = vpop.eup %826  ;;  %738 = vmatpush3.msra.mxu0 %v930_v1 }
  0xdc   : > { %733 = vmatmul.mubr.f32.vlgmr.msra.gmra.mxu1 %v827_v11  ;;  %739 = vmatprep.subr.mxu0 %v929_v0 }
  0xdd   : > { %740 = vmatpush3.msra.mxu0 %v930_v1 }
  0xde   : > { %741 = vmatprep.subr.mxu0 %v929_v0 }
  0xdf   : > { %742 = vmatpush3.msra.mxu0 %v930_v1 }
  0xe0   : > { %743 = vmatprep.subr.mxu0 %v929_v0 }
  0xe1   : > { %744 = vmatpush3.msra.mxu0 %v930_v1 }
  0xe2   : > { %745 = vmatprep.subr.mxu0 %v929_v0 }
  0xe3   : > { %746 = vmatpush3.msra.mxu0 %v930_v1 }
  0xe4   : > { %747 = vmatprep.subr.mxu0 %v929_v0 }
  0xe5   : > { %748 = vmatpush3.msra.mxu0 %v930_v1 }
  0xe6   : > { %749 = vmatprep.subr.mxu0 %v929_v0 }
  0xe7   : > { %750 = vmatpush3.msra.mxu0 %v930_v1 }
  0xe8   : > { %751 = vmatprep.subr.mxu0 %v929_v0 }
  0xe9   : > { %752 = vmatpush3.msra.mxu0 %v930_v1 }
  0xea   : > { %753 = vmatprep.subr.mxu0 %v929_v0 }
  0xeb   : > { %754 = vmatpush3.msra.mxu0 %v930_v1 }
  0xec   : > { %755 = vmatprep.subr.mxu0 %v929_v0 }
  0xed   : > { %756 = vmatpush3.msra.mxu0 %v930_v1 }
  0xee   : > { %757 = vmatprep.subr.mxu0 %v929_v0 }
  0xef   : > { %758 = vmatpush3.msra.mxu0 %v930_v1 }
  0xf0   : > { %759 = vmatprep.subr.mxu0 %v929_v0 }
  0xf1   : > { %760 = vmatpush3.msra.mxu0 %v930_v1 }
  0xf2   : > { %761 = vmatprep.subr.mxu0 %v929_v0 }
  0xf3   : > { %762 = vmatpush3.msra.mxu0 %v930_v1 }
  0xf4   : > { %763 = vmatprep.subr.mxu0 %v929_v0 }
  0xf5   : > { %764 = vmatpush3.msra.mxu0 %v930_v1 }
  0xf6   : > { %765 = vmatprep.subr.mxu0 %v929_v0 }
  0xf7   : > { %766 = vmatpush3.msra.mxu0 %v930_v1 }
 0x198   : > { %v294_v14 = vpop.f32.mrf.mxu0 }
 0x199   : > { %828 = vlog2.f32 %v294_v14 }
 0x19a   : > { %v699_v15 = vpop.f32.mrf.mxu0 }
 0x19c   : > { %v377_v16 = vpop.f32.mrf.mxu1 }
 0x19d   : > { %830 = vlog2.f32 %v377_v16 }
 0x19e   : > { %832 = vrcp.f32 %v377_v16  ;;  %v734_v17 = vpop.f32.mrf.mxu1 }
 0x1a6   : > { %v829_v18 = vpop.eup %828 }
 0x1a7   : > { %v299_v19 = vmul.f32 0.6931472, %v829_v18 }
 0x1a9   : > { %302 = vperm.xlu0 %823, %v299_v19  }
 0x1aa   : > { %v831_v20 = vpop.eup %830 }
 0x1ab   : > { %v833_v21 = vpop.eup %832  ;;  %v382_v22 = vmul.f32 0.6931472, %v831_v20 }
 0x1ac   : > { %392 = vperm.xlu1 %822, %v833_v21  }
 0x1b0   : > { %385 = vperm.xlu1 %822, %v382_v22  }
 0x224   : > { %v303_v29 = vpop.permute.xlu0 %302 }
 0x225   : > { %v305_v32 = vsub.f32 %v1140_v5, %v303_v29 }
 0x227   : > { %v393_v26 = vpop.permute.xlu1 %392 }
 0x228   : > { %v395_v27 = vmul.f32 %v827_v11, %v393_v26 }
 0x22a   : > { %v404_v30 = vadd.f32 %v609_v28, %v395_v27 }
 0x22b   : > { %v386_v31 = vpop.permute.xlu1 %385 }
 0x22c   : > { %v388_v33 = vsub.f32 %v1143_v8, %v386_v31  ;;  %v406_v34 = vmul.f32 %v404_v30, %v305_v32 }
 0x22e   : > { %v405_v35 = vmul.f32 %v395_v27, %v388_v33 }
 0x230   : > { %v407_v36 = vsub.f32 %v405_v35, %v406_v34 }
 0x232   : > { %768 = vmatmul.mubr.f32.vlgmr.msra.gmra.mxu0 %v407_v36 }
 0x2f2   : > { %v474_v37 = vpop.f32.mrf.mxu0 }
 0x2f3   : > { %v479_v38 = vsel %vm478_vm2, %v474_v37, 0.0 }
 0x2f4   : > { %480 = vadd.xlane.f32.xlu1 %v479_v38  ;;  %v769_v39 = vpop.f32.mrf.mxu0 }
 0x37d   : > { %v481_v40 = vpop.xlane.xlu1 %480 }
 0x37e   : > { %v482_v41 = vrot.slane %v481_v40, 4 }
 0x380   : > { %v483_v42 = vadd.f32 %v482_v41, %v481_v40 }
 0x382   : > { %v484_v43 = vrot.slane %v483_v42, 2 }
 0x384   : > { %v485_v44 = vadd.f32 %v484_v43, %v483_v42 }
 0x386   : > { %v486_v45 = vrot.slane %v485_v44, 1 }
 0x388   : > { %v487_v46 = vadd.f32 %v486_v45, %v485_v44 }
 0x38a   : > { %770 = vpush %v487_v46 }
 0x3bb   : > { %s771_s26 = spop %770 }
 0x3bc   : > { %v489_v47 = vstv %s771_s26 }
 0x3bd   : > { %490 = vst [vmem:[%s211_s19] sm:$0xff] %v489_v47 }
 0x3be   : > { %875 = shalt.err (!%p872_p1)
}
 0x3bf   : > { %s876_s6 = scalar_lea.hbm %s503_s5, 128  ;;  %s880_s9 = scalar_lea.hbm %s1232_s3, 512 }
 0x3c0   : > { %p877_p3 = scmp.ne.s32.totalorder %s503_s5, %s876_s6  ;;  %p881_p13 = scmp.lt.s32.totalorder %s503_s5, %s1232_s3 }
 0x3c1   : > { %p882_p6 = scmp.lt.s32.totalorder %s880_s9, %s876_s6 }
 0x3c2   : > { %p878_p4 = pnand %p877_p3, %p1243_p12 }
 0x3c3   : > { %p883_p10 = por %p882_p6, %p881_p13 }
 0x3c4   : > { %p879_p5 = pneg %p878_p4 }
 0x3c6   : > { %p884_p11 = pnand %p883_p10, %p879_p5 }
 0x3c8   : > { %887 = shalt.err (!%p884_p11)
}
 0x3c9   : > { %774 = dma.vmem_to_hbm [thread:$0]  (%p1243_p12), %s1190_s20, 128, %s503_s5, %s492_s7  }
 0x3ca PF: > { %p785_p0 = scmp.ge.s32.totalorder %s926_s15, 2  ;;  %s517_s17 = sand.u32 1, %s914_s12  }
 0x3cb   : > { %p1244_p2 = scmp.ne.s32.totalorder %s1238_s25, 0  ;;  %s518_s19 = scalar_lea.sflag [#allocation4], %s517_s17 }
 0x3cd   : > { %p781_p7 = pnand %p785_p0, %p1244_p2 }
 0x3cf   : > { %p782_p8 = pneg %p781_p7 }
 0x3d1   : > { %909 = dma.done.wait (%p782_p8), %s518_s19, 128  }
 0x3d2   : > { %911 = vsyncadd (%p782_p8), %s518_s19, 4294967168  ;;  %p16_p9 = scmp.ge.s32.totalorder %s979_s18, 6   ;;  %s1245_s12 = smov %s918_s13 }
 0x3d3   : > { %s1246_s13 = smov %s922_s14  ;;  %s1247_s14 = smov %s991_s21 }
 0x3d4   : > { %s1248_s15 = smov %s979_s18  ;;  %18 = sbr.rel (!%p16_p9) target bundleno = 5 (0x5), region = 83 }
 0x3d9   :  { %523 = vsyncpa [#allocation3], 1 }
 0x3da   :  { %525 = vsyncpa [#allocation3 + $0x1], 1 }
 0x3db   :  { %526 = vsyncpa [#allocation4], 1 }
 0x3dc   :  { %528 = vsyncpa [#allocation4 + $0x1], 1 }

</bundles_post_ra>
